<compile_context>
chip_gen: v6e
topology: v6e:2x2x1
jax: 0.10.0
libtpu: 0.0.40
codegen_flags: <defaults>
</compile_context>

<pallas_src>
import functools
import math

import jax
import jax.numpy as jnp
from jax.experimental import pallas as pl
from jax.experimental.pallas import tpu as pltpu


def _round_up(n, m):
    return ((n + m - 1) // m) * m


def _gelu_f32(x, approximate):
    if approximate:
        # tanh approximation (EUP path) — changes numerics vs torch nn.GELU() default.
        c = math.sqrt(2.0 / math.pi)
        return 0.5 * x * (1.0 + jnp.tanh(c * (x + 0.044715 * x * x * x)))
    # exact erf formulation == torch nn.GELU() default.
    return 0.5 * x * (1.0 + jax.lax.erf(x * (1.0 / math.sqrt(2.0))))


def _mlp_kernel(x_ref, w1_ref, b1_ref, w2_ref, b2_ref, o_ref, acc_ref, *,
                approximate_gelu):
    """One (token-tile, hidden-tile) grid step of x @ W1 + b1 -> GELU -> @ W2 + b2."""
    h_idx = pl.program_id(1)

    @pl.when(h_idx == 0)
    def _():
        acc_ref[...] = jnp.zeros_like(acc_ref)

    # fc1 partial product: native-dtype MXU matmul, f32 accumulation.
    h = jnp.dot(x_ref[...], w1_ref[...], preferred_element_type=jnp.float32)
    h = _gelu_f32(h + b1_ref[...].astype(jnp.float32), approximate_gelu)

    # fc2 partial product, accumulated across hidden blocks in an f32 VMEM scratch.
    acc_ref[...] += jnp.dot(h.astype(w2_ref.dtype), w2_ref[...],
                            preferred_element_type=jnp.float32)

    @pl.when(h_idx == pl.num_programs(1) - 1)
    def _():
        # dropout p=0.0 is the identity -> nothing else to do.
        o_ref[...] = (acc_ref[...] + b2_ref[...].astype(jnp.float32)).astype(o_ref.dtype)


def _block_spec(shape, index_map, mode):
    if mode is None:
        return pl.BlockSpec(shape, index_map)
    return pl.BlockSpec(shape, index_map, pipeline_mode=mode)


def _default_vmem_limit(tm, th, in_features, hidden, out_features, act_dtype, w_dtype):
    act = jnp.dtype(act_dtype).itemsize
    wt = jnp.dtype(w_dtype).itemsize
    num_h = hidden // th
    wbuf = 1 if num_h == 1 else 2  # single- vs double-buffered weight blocks
    est = (2 * tm * in_features * act                 # x tile, double-buffered
           + wbuf * (in_features * th + th) * wt      # W1 block + b1 block
           + wbuf * th * out_features * wt            # W2 block
           + out_features * wt                        # b2
           + 2 * tm * out_features * act              # out tile, double-buffered
           + tm * out_features * 4)                   # f32 accumulator scratch
    # headroom + clamp: >= 32 MiB (scoped defaults: 16 MiB v5e / 32 MiB v6e,v7x),
    # <= 64 MiB (v7x physical VMEM per TensorCore).
    return min(max(est + (8 << 20), 32 << 20), 64 << 20)


def _run_mlp(x2d, w1, b1_2d, w2, b2_2d, *, tm, th, approximate_gelu,
             single_buffer_weights, vmem_limit_bytes):
    m_pad, in_features = x2d.shape
    hidden = w1.shape[1]
    out_features = w2.shape[1]
    num_m = m_pad // tm
    num_h = hidden // th

    # Weight/bias blocks are grid-invariant when the hidden dim is not blocked;
    # double-buffering them just wastes VMEM, so request single buffering.
    w_mode = pl.Buffered(1) if (single_buffer_weights and num_h == 1) else None
    b2_mode = pl.Buffered(1) if single_buffer_weights else None

    kernel = functools.partial(_mlp_kernel, approximate_gelu=approximate_gelu)

    return pl.pallas_call(
        kernel,
        out_shape=jax.ShapeDtypeStruct((m_pad, out_features), x2d.dtype),
        grid_spec=pltpu.PrefetchScalarGridSpec(
            num_scalar_prefetch=0,
            grid=(num_m, num_h),
            in_specs=[
                pl.BlockSpec((tm, in_features), lambda i, h: (i, 0)),          # x tile
                _block_spec((in_features, th), lambda i, h: (0, h), w_mode),   # W1 block
                _block_spec((1, th), lambda i, h: (0, h), w_mode),             # b1 block
                _block_spec((th, out_features), lambda i, h: (h, 0), w_mode),  # W2 block
                _block_spec((1, out_features), lambda i, h: (0, 0), b2_mode),  # b2
            ],
            out_specs=pl.BlockSpec((tm, out_features), lambda i, h: (i, 0)),
            scratch_shapes=[pltpu.VMEM((tm, out_features), jnp.float32)],
        ),
        compiler_params=pltpu.CompilerParams(
            dimension_semantics=("parallel", "arbitrary"),
            vmem_limit_bytes=vmem_limit_bytes,
        ),
    )(x2d, w1, b1_2d, w2, b2_2d)


def mlp_pallas(x, w1, b1, w2, b2, *, tile_m=256, block_h=None,
               approximate_gelu=False, vmem_limit_bytes=None):
    """Fused fc1 -> GELU -> fc2 (dropout p=0.0) for x of shape (..., in_features)."""
    in_features = x.shape[-1]
    hidden = w1.shape[1]
    out_features = w2.shape[1]
    lead_shape = x.shape[:-1]

    x2d = x.reshape(-1, in_features)
    m = x2d.shape[0]

    # Large MXU-filling token tile, 8-aligned (sublane), clamped to the problem size.
    tm = _round_up(min(tile_m, _round_up(m, 8)), 8)
    m_pad = _round_up(m, tm)
    if m_pad != m:
        x2d = jnp.pad(x2d, ((0, m_pad - m), (0, 0)))

    # Hidden blocking: only used for clean 128-aligned even splits (lane constraint);
    # keeps full W1/W2 out of VMEM at once on VMEM-limited parts (v7x).
    if (block_h is not None and block_h < hidden
            and block_h % 128 == 0 and hidden % block_h == 0):
        th = block_h
    else:
        th = hidden

    b1_2d = b1.reshape(1, hidden)
    b2_2d = b2.reshape(1, out_features)

    if vmem_limit_bytes is None:
        vmem_limit_bytes = _default_vmem_limit(
            tm, th, in_features, hidden, out_features, x.dtype, w1.dtype)

    kwargs = dict(tm=tm, th=th, approximate_gelu=approximate_gelu,
                  vmem_limit_bytes=vmem_limit_bytes)
    try:
        out2d = _run_mlp(x2d, w1, b1_2d, w2, b2_2d,
                         single_buffer_weights=True, **kwargs)
    except Exception:
        # pipeline_mode / pl.Buffered(1) not supported by this jax+libtpu combo:
        # fall back to default (double-buffered) resident weights. Same kernel, same math.
        out2d = _run_mlp(x2d, w1, b1_2d, w2, b2_2d,
                         single_buffer_weights=False, **kwargs)

    if m_pad != m:
        out2d = out2d[:m]
    return out2d.reshape(*lead_shape, out_features)


def init_mlp_params(key, in_features, hidden_features, out_features, dtype=jnp.float32):
    """Deterministic init mimicking torch.nn.Linear defaults (kaiming-uniform-ish)."""
    k1, k2, k3, k4 = jax.random.split(key, 4)
    bound1 = 1.0 / math.sqrt(in_features)
    bound2 = 1.0 / math.sqrt(hidden_features)
    # stored already transposed: [in, hidden] and [hidden, out]
    w1 = jax.random.uniform(k1, (in_features, hidden_features), dtype, -bound1, bound1)
    b1 = jax.random.uniform(k2, (hidden_features,), dtype, -bound1, bound1)
    w2 = jax.random.uniform(k3, (hidden_features, out_features), dtype, -bound2, bound2)
    b2 = jax.random.uniform(k4, (out_features,), dtype, -bound2, bound2)
    return w1, b1, w2, b2


if __name__ == "__main__":
    key = jax.random.PRNGKey(0)

    def reference(x, w1, b1, w2, b2):
        xf = x.astype(jnp.float32)
        h = jax.nn.gelu(xf @ w1.astype(jnp.float32) + b1.astype(jnp.float32),
                        approximate=False)
        return h @ w2.astype(jnp.float32) + b2.astype(jnp.float32)

    # --- test 1: mlp_ratio=3 FFN from taskBlock, ragged token count (exercises padding)
    B, N, dim = 2, 9, 32
    hidden = dim * 3
    k1, k2 = jax.random.split(key)
    x = jax.random.normal(k1, (B, N, dim), dtype=jnp.float32)
    w1, b1, w2, b2 = init_mlp_params(k2, dim, hidden, dim)
    y = jax.block_until_ready(mlp_pallas(x, w1, b1, w2, b2))
    y_ref = reference(x, w1, b1, w2, b2)
    assert y.shape == (B, N, dim)
    assert jnp.allclose(y, y_ref, atol=1e-5, rtol=1e-5), "f32 mismatch vs reference"

    # --- test 2: 128-aligned shapes + blocked hidden dim (f32 accumulator path)
    B2, N2, dim2 = 2, 8, 128
    hidden2 = dim2 * 3
    k3, k4 = jax.random.split(k2)
    x2 = jax.random.normal(k3, (B2, N2, dim2), dtype=jnp.float32)
    w1b, b1b, w2b, b2b = init_mlp_params(k4, dim2, hidden2, dim2)
    y2 = jax.block_until_ready(mlp_pallas(x2, w1b, b1b, w2b, b2b, block_h=128))
    y2_ref = reference(x2, w1b, b1b, w2b, b2b)
    assert y2.shape == (B2, N2, dim2)
    assert jnp.allclose(y2, y2_ref, atol=5e-4, rtol=5e-4), "blocked-hidden mismatch"

    # --- test 3: bf16 activations/weights feed the MXU directly (f32 accumulation)
    xb = x.astype(jnp.bfloat16)
    w1h, b1h = w1.astype(jnp.bfloat16), b1.astype(jnp.bfloat16)
    w2h, b2h = w2.astype(jnp.bfloat16), b2.astype(jnp.bfloat16)
    yb = jax.block_until_ready(mlp_pallas(xb, w1h, b1h, w2h, b2h))
    assert yb.dtype == jnp.bfloat16
    assert jnp.allclose(yb.astype(jnp.float32), y_ref, atol=5e-2, rtol=5e-2), "bf16 mismatch"

    print("KERNEL_OK")
</pallas_src>

<mosaic_0001>
module attributes {stable_mosaic.version = 11 : i64} {
  func.func @_mlp_kernel(%arg0: i32, %arg1: i32, %arg2: memref<24x32xf32, #tpu.memory_space<vmem>>, %arg3: memref<32x96xf32, #tpu.memory_space<vmem>>, %arg4: memref<1x96xf32, #tpu.memory_space<vmem>>, %arg5: memref<96x32xf32, #tpu.memory_space<vmem>>, %arg6: memref<1x32xf32, #tpu.memory_space<vmem>>, %arg7: memref<24x32xf32, #tpu.memory_space<vmem>>, %arg8: memref<24x32xf32, #tpu.memory_space<vmem>>) attributes {dimension_semantics = [#tpu.dimension_semantics<parallel>, #tpu.dimension_semantics<arbitrary>], iteration_bounds = array<i64: 1, 1>, scalar_prefetch = 0 : i64, scratch_operands = 1 : i64, tpu.core_type = #tpu.core_type<tc>, window_params = [{transform_indices = @transform_0, window_bounds = array<i64: 24, 32>}, {pipeline_mode = #tpu.pipeline_mode<synchronous>, transform_indices = @transform_1, window_bounds = array<i64: 32, 96>}, {pipeline_mode = #tpu.pipeline_mode<synchronous>, transform_indices = @transform_2, window_bounds = array<i64: 1, 96>}, {pipeline_mode = #tpu.pipeline_mode<synchronous>, transform_indices = @transform_3, window_bounds = array<i64: 96, 32>}, {pipeline_mode = #tpu.pipeline_mode<synchronous>, transform_indices = @transform_4, window_bounds = array<i64: 1, 32>}, {transform_indices = @transform_5, window_bounds = array<i64: 24, 32>}]} {
    %c0_i32 = arith.constant 0 : i32
    %0 = arith.cmpi eq, %arg1, %c0_i32 : i32
    %1 = arith.extui %0 : i1 to i32
    %c0_i32_0 = arith.constant 0 : i32
    %2 = arith.cmpi ne, %1, %c0_i32_0 : i32
    scf.if %2 {
      %cst_18 = arith.constant 0.000000e+00 : f32
      %25 = vector.broadcast %cst_18 : f32 to vector<24x32xf32>
      %c0_19 = arith.constant 0 : index
      %c0_20 = arith.constant 0 : index
      %26 = vector.load %arg8[%c0_19, %c0_20] : memref<24x32xf32, #tpu.memory_space<vmem>>, vector<24x32xf32>
      tpu.vector_store %arg8[%c0_19, %c0_20], %25 {strides = array<i32>} : memref<24x32xf32, #tpu.memory_space<vmem>>, vector<24x32xf32>,
    } else {
    }
    %c0 = arith.constant 0 : index
    %c0_1 = arith.constant 0 : index
    %3 = vector.load %arg2[%c0, %c0_1] : memref<24x32xf32, #tpu.memory_space<vmem>>, vector<24x32xf32>
    %c0_2 = arith.constant 0 : index
    %c0_3 = arith.constant 0 : index
    %4 = vector.load %arg3[%c0_2, %c0_3] : memref<32x96xf32, #tpu.memory_space<vmem>>, vector<32x96xf32>
    %cst = arith.constant dense<0.000000e+00> : vector<24x96xf32>
    %5 = tpu.matmul %3, %4, %cst {dimension_numbers = #tpu.dot_dimension_numbers<[1], [0], [0], [1], [0, 0, 1, 1], [], []>} : vector<24x32xf32>, vector<32x96xf32>, vector<24x96xf32> -> vector<24x96xf32>
    %c0_4 = arith.constant 0 : index
    %c0_5 = arith.constant 0 : index
    %6 = vector.load %arg4[%c0_4, %c0_5] : memref<1x96xf32, #tpu.memory_space<vmem>>, vector<1x96xf32>
    %7 = vector.broadcast %6 : vector<1x96xf32> to vector<24x96xf32>
    %8 = arith.addf %5, %7 : vector<24x96xf32>
    %cst_6 = arith.constant 5.000000e-01 : f32
    %9 = vector.broadcast %cst_6 : f32 to vector<24x96xf32>
    %10 = arith.mulf %9, %8 : vector<24x96xf32>
    %cst_7 = arith.constant 0.707106769 : f32
    %11 = vector.broadcast %cst_7 : f32 to vector<24x96xf32>
    %12 = arith.mulf %8, %11 : vector<24x96xf32>
    %13 = math.erf %12 : vector<24x96xf32>
    %cst_8 = arith.constant 1.000000e+00 : f32
    %14 = vector.broadcast %cst_8 : f32 to vector<24x96xf32>
    %15 = arith.addf %14, %13 : vector<24x96xf32>
    %16 = arith.mulf %10, %15 : vector<24x96xf32>
    %c0_9 = arith.constant 0 : index
    %c0_10 = arith.constant 0 : index
    %17 = vector.load %arg8[%c0_9, %c0_10] : memref<24x32xf32, #tpu.memory_space<vmem>>, vector<24x32xf32>
    %c0_11 = arith.constant 0 : index
    %c0_12 = arith.constant 0 : index
    %18 = vector.load %arg5[%c0_11, %c0_12] : memref<96x32xf32, #tpu.memory_space<vmem>>, vector<96x32xf32>
    %cst_13 = arith.constant dense<0.000000e+00> : vector<24x32xf32>
    %19 = tpu.matmul %16, %18, %cst_13 {dimension_numbers = #tpu.dot_dimension_numbers<[1], [0], [0], [1], [0, 0, 1, 1], [], []>} : vector<24x96xf32>, vector<96x32xf32>, vector<24x32xf32> -> vector<24x32xf32>
    %20 = arith.addf %17, %19 : vector<24x32xf32>
    %c0_14 = arith.constant 0 : index
    %c0_15 = arith.constant 0 : index
    %21 = vector.load %arg8[%c0_14, %c0_15] : memref<24x32xf32, #tpu.memory_space<vmem>>, vector<24x32xf32>
    tpu.vector_store %arg8[%c0_14, %c0_15], %20 {strides = array<i32>} : memref<24x32xf32, #tpu.memory_space<vmem>>, vector<24x32xf32>,
    %c0_i32_16 = arith.constant 0 : i32
    %22 = arith.cmpi eq, %arg1, %c0_i32_16 : i32
    %23 = arith.extui %22 : i1 to i32
    %c0_i32_17 = arith.constant 0 : i32
    %24 = arith.cmpi ne, %23, %c0_i32_17 : i32
    scf.if %24 {
      %c0_18 = arith.constant 0 : index
      %c0_19 = arith.constant 0 : index
      %25 = vector.load %arg8[%c0_18, %c0_19] : memref<24x32xf32, #tpu.memory_space<vmem>>, vector<24x32xf32>
      %c0_20 = arith.constant 0 : index
      %c0_21 = arith.constant 0 : index
      %26 = vector.load %arg6[%c0_20, %c0_21] : memref<1x32xf32, #tpu.memory_space<vmem>>, vector<1x32xf32>
      %27 = vector.broadcast %26 : vector<1x32xf32> to vector<24x32xf32>
      %28 = arith.addf %25, %27 : vector<24x32xf32>
      %c0_22 = arith.constant 0 : index
      %c0_23 = arith.constant 0 : index
      %29 = vector.load %arg7[%c0_22, %c0_23] : memref<24x32xf32, #tpu.memory_space<vmem>>, vector<24x32xf32>
      tpu.vector_store %arg7[%c0_22, %c0_23], %28 {strides = array<i32>} : memref<24x32xf32, #tpu.memory_space<vmem>>, vector<24x32xf32>,
    } else {
    }
    return
  }
  func.func @transform_0(%arg0: i32, %arg1: i32) -> (i32, i32) {
    %c0_i32 = arith.constant 0 : i32
    %c0_i32_0 = arith.constant 0 : i32
    return %arg0, %c0_i32 : i32, i32
  }
  func.func @transform_1(%arg0: i32, %arg1: i32) -> (i32, i32) {
    %c0_i32 = arith.constant 0 : i32
    %c0_i32_0 = arith.constant 0 : i32
    return %c0_i32, %arg1 : i32, i32
  }
  func.func @transform_2(%arg0: i32, %arg1: i32) -> (i32, i32) {
    %c0_i32 = arith.constant 0 : i32
    %c0_i32_0 = arith.constant 0 : i32
    return %c0_i32, %arg1 : i32, i32
  }
  func.func @transform_3(%arg0: i32, %arg1: i32) -> (i32, i32) {
    %c0_i32 = arith.constant 0 : i32
    %c0_i32_0 = arith.constant 0 : i32
    return %arg1, %c0_i32 : i32, i32
  }
  func.func @transform_4(%arg0: i32, %arg1: i32) -> (i32, i32) {
    %c0_i32 = arith.constant 0 : i32
    %c0_i32_0 = arith.constant 0 : i32
    %c0_i32_1 = arith.constant 0 : i32
    return %c0_i32, %c0_i32_0 : i32, i32
  }
  func.func @transform_5(%arg0: i32, %arg1: i32) -> (i32, i32) {
    %c0_i32 = arith.constant 0 : i32
    %c0_i32_0 = arith.constant 0 : i32
    return %arg0, %c0_i32 : i32, i32
  }
}

module attributes {stable_mosaic.version = 11 : i64} {
  func.func @_mlp_kernel(%arg0: i32, %arg1: i32, %arg2: memref<24x32xf32, #tpu.memory_space<vmem>>, %arg3: memref<32x96xf32, #tpu.memory_space<vmem>>, %arg4: memref<1x96xf32, #tpu.memory_space<vmem>>, %arg5: memref<96x32xf32, #tpu.memory_space<vmem>>, %arg6: memref<1x32xf32, #tpu.memory_space<vmem>>, %arg7: memref<24x32xf32, #tpu.memory_space<vmem>>, %arg8: memref<24x32xf32, #tpu.memory_space<vmem>>) attributes {dimension_semantics = [#tpu.dimension_semantics<parallel>, #tpu.dimension_semantics<arbitrary>], iteration_bounds = array<i64: 1, 1>, scalar_prefetch = 0 : i64, scratch_operands = 1 : i64, tpu.core_type = #tpu.core_type<tc>, window_params = [{transform_indices = @transform_0, window_bounds = array<i64: 24, 32>}, {transform_indices = @transform_1, window_bounds = array<i64: 32, 96>}, {transform_indices = @transform_2, window_bounds = array<i64: 1, 96>}, {transform_indices = @transform_3, window_bounds = array<i64: 96, 32>}, {pipeline_mode = #tpu.pipeline_mode<synchronous>, transform_indices = @transform_4, window_bounds = array<i64: 1, 32>}, {transform_indices = @transform_5, window_bounds = array<i64: 24, 32>}]} {
    %c0_i32 = arith.constant 0 : i32
    %0 = arith.cmpi eq, %arg1, %c0_i32 : i32
    %1 = arith.extui %0 : i1 to i32
    %c0_i32_0 = arith.constant 0 : i32
    %2 = arith.cmpi ne, %1, %c0_i32_0 : i32
    scf.if %2 {
      %cst_18 = arith.constant 0.000000e+00 : f32
      %25 = vector.broadcast %cst_18 : f32 to vector<24x32xf32>
      %c0_19 = arith.constant 0 : index
      %c0_20 = arith.constant 0 : index
      %26 = vector.load %arg8[%c0_19, %c0_20] : memref<24x32xf32, #tpu.memory_space<vmem>>, vector<24x32xf32>
      tpu.vector_store %arg8[%c0_19, %c0_20], %25 {strides = array<i32>} : memref<24x32xf32, #tpu.memory_space<vmem>>, vector<24x32xf32>,
    } else {
    }
    %c0 = arith.constant 0 : index
    %c0_1 = arith.constant 0 : index
    %3 = vector.load %arg2[%c0, %c0_1] : memref<24x32xf32, #tpu.memory_space<vmem>>, vector<24x32xf32>
    %c0_2 = arith.constant 0 : index
    %c0_3 = arith.constant 0 : index
    %4 = vector.load %arg3[%c0_2, %c0_3] : memref<32x96xf32, #tpu.memory_space<vmem>>, vector<32x96xf32>
    %cst = arith.constant dense<0.000000e+00> : vector<24x96xf32>
    %5 = tpu.matmul %3, %4, %cst {dimension_numbers = #tpu.dot_dimension_numbers<[1], [0], [0], [1], [0, 0, 1, 1], [], []>} : vector<24x32xf32>, vector<32x96xf32>, vector<24x96xf32> -> vector<24x96xf32>
    %c0_4 = arith.constant 0 : index
    %c0_5 = arith.constant 0 : index
    %6 = vector.load %arg4[%c0_4, %c0_5] : memref<1x96xf32, #tpu.memory_space<vmem>>, vector<1x96xf32>
    %7 = vector.broadcast %6 : vector<1x96xf32> to vector<24x96xf32>
    %8 = arith.addf %5, %7 : vector<24x96xf32>
    %cst_6 = arith.constant 5.000000e-01 : f32
    %9 = vector.broadcast %cst_6 : f32 to vector<24x96xf32>
    %10 = arith.mulf %9, %8 : vector<24x96xf32>
    %cst_7 = arith.constant 0.707106769 : f32
    %11 = vector.broadcast %cst_7 : f32 to vector<24x96xf32>
    %12 = arith.mulf %8, %11 : vector<24x96xf32>
    %13 = math.erf %12 : vector<24x96xf32>
    %cst_8 = arith.constant 1.000000e+00 : f32
    %14 = vector.broadcast %cst_8 : f32 to vector<24x96xf32>
    %15 = arith.addf %14, %13 : vector<24x96xf32>
    %16 = arith.mulf %10, %15 : vector<24x96xf32>
    %c0_9 = arith.constant 0 : index
    %c0_10 = arith.constant 0 : index
    %17 = vector.load %arg8[%c0_9, %c0_10] : memref<24x32xf32, #tpu.memory_space<vmem>>, vector<24x32xf32>
    %c0_11 = arith.constant 0 : index
    %c0_12 = arith.constant 0 : index
    %18 = vector.load %arg5[%c0_11, %c0_12] : memref<96x32xf32, #tpu.memory_space<vmem>>, vector<96x32xf32>
    %cst_13 = arith.constant dense<0.000000e+00> : vector<24x32xf32>
    %19 = tpu.matmul %16, %18, %cst_13 {dimension_numbers = #tpu.dot_dimension_numbers<[1], [0], [0], [1], [0, 0, 1, 1], [], []>} : vector<24x96xf32>, vector<96x32xf32>, vector<24x32xf32> -> vector<24x32xf32>
    %20 = arith.addf %17, %19 : vector<24x32xf32>
    %c0_14 = arith.constant 0 : index
    %c0_15 = arith.constant 0 : index
    %21 = vector.load %arg8[%c0_14, %c0_15] : memref<24x32xf32, #tpu.memory_space<vmem>>, vector<24x32xf32>
    tpu.vector_store %arg8[%c0_14, %c0_15], %20 {strides = array<i32>} : memref<24x32xf32, #tpu.memory_space<vmem>>, vector<24x32xf32>,
    %c0_i32_16 = arith.constant 0 : i32
    %22 = arith.cmpi eq, %arg1, %c0_i32_16 : i32
    %23 = arith.extui %22 : i1 to i32
    %c0_i32_17 = arith.constant 0 : i32
    %24 = arith.cmpi ne, %23, %c0_i32_17 : i32
    scf.if %24 {
      %c0_18 = arith.constant 0 : index
      %c0_19 = arith.constant 0 : index
      %25 = vector.load %arg8[%c0_18, %c0_19] : memref<24x32xf32, #tpu.memory_space<vmem>>, vector<24x32xf32>
      %c0_20 = arith.constant 0 : index
      %c0_21 = arith.constant 0 : index
      %26 = vector.load %arg6[%c0_20, %c0_21] : memref<1x32xf32, #tpu.memory_space<vmem>>, vector<1x32xf32>
      %27 = vector.broadcast %26 : vector<1x32xf32> to vector<24x32xf32>
      %28 = arith.addf %25, %27 : vector<24x32xf32>
      %c0_22 = arith.constant 0 : index
      %c0_23 = arith.constant 0 : index
      %29 = vector.load %arg7[%c0_22, %c0_23] : memref<24x32xf32, #tpu.memory_space<vmem>>, vector<24x32xf32>
      tpu.vector_store %arg7[%c0_22, %c0_23], %28 {strides = array<i32>} : memref<24x32xf32, #tpu.memory_space<vmem>>, vector<24x32xf32>,
    } else {
    }
    return
  }
  func.func @transform_0(%arg0: i32, %arg1: i32) -> (i32, i32) {
    %c0_i32 = arith.constant 0 : i32
    %c0_i32_0 = arith.constant 0 : i32
    return %arg0, %c0_i32 : i32, i32
  }
  func.func @transform_1(%arg0: i32, %arg1: i32) -> (i32, i32) {
    %c0_i32 = arith.constant 0 : i32
    %c0_i32_0 = arith.constant 0 : i32
    return %c0_i32, %arg1 : i32, i32
  }
  func.func @transform_2(%arg0: i32, %arg1: i32) -> (i32, i32) {
    %c0_i32 = arith.constant 0 : i32
    %c0_i32_0 = arith.constant 0 : i32
    return %c0_i32, %arg1 : i32, i32
  }
  func.func @transform_3(%arg0: i32, %arg1: i32) -> (i32, i32) {
    %c0_i32 = arith.constant 0 : i32
    %c0_i32_0 = arith.constant 0 : i32
    return %arg1, %c0_i32 : i32, i32
  }
  func.func @transform_4(%arg0: i32, %arg1: i32) -> (i32, i32) {
    %c0_i32 = arith.constant 0 : i32
    %c0_i32_0 = arith.constant 0 : i32
    %c0_i32_1 = arith.constant 0 : i32
    return %c0_i32, %c0_i32_0 : i32, i32
  }
  func.func @transform_5(%arg0: i32, %arg1: i32) -> (i32, i32) {
    %c0_i32 = arith.constant 0 : i32
    %c0_i32_0 = arith.constant 0 : i32
    return %arg0, %c0_i32 : i32, i32
  }
}

</mosaic_0001>

<bundles_post_ra>
// kernel: tpu_custom_call.1
= control target key start
LH: loop header
LB: loop body
LE: loop exit
PB: predicated region body
PF: predicated region fallthrough
CT: control target
= control target key end

     0   :  { %vm25_vm0 = vcmask 261120   ;;  %v407_v1 = vmov 0.0   ;;  %vm408_vm1 = vmmov 0   ;;  %s551_s0 = inlined_call_operand.vmem [shape: f32[24,32], index: 0, kind: input, shape index: {}]   ;;  %s552_s1 = inlined_call_operand.vmem [shape: f32[32,96], index: 1, kind: input, shape index: {}]   ;;  %s553_s2 = inlined_call_operand.vmem [shape: f32[1,96], index: 2, kind: input, shape index: {}]   ;;  %s554_s3 = inlined_call_operand.vmem [shape: f32[96,32], index: 3, kind: input, shape index: {}]   ;;  %s555_s4 = inlined_call_operand.vmem [shape: f32[1,32], index: 4, kind: input, shape index: {}]   ;;  %s556_s5 = inlined_call_operand.hbm [shape: f32[24,32], index: 5, kind: output, shape index: {}]  }
   0x1   :  { %v35_v0 = vld [vmem:[%s552_s1 + $0x18] sm:$0xff]  ;;  %324 = vmatprep.subr.mxu0 %v407_v1  ;;  %v34_v2 = vld [vmem:[%s552_s1 + $0x10] sm:$0xff]  ;;  %332 = vmatprep.mubr.msk.f32.mxu0 %vm408_vm1, %v407_v1  ;;  %26 = vst.msk [vmem:[#allocation2] sm:$0xff] %vm25_vm0, %v407_v1  ;;  %27 = vst.msk [vmem:[#allocation2 + $0x8] sm:$0xff] %vm25_vm0, %v407_v1 }
   0x2   :  { %28 = vst.msk [vmem:[#allocation2 + $0x10] sm:$0xff] %vm25_vm0, %v407_v1  ;;  %325 = vmatpush3.msra.mxu0 %v35_v0  ;;  %341 = vmatprep.subr.mxu1 %v407_v1 }
   0x3   :  { %10 = vsyncpa [#allocation4], 0  ;;  %326 = vmatprep.subr.mxu0 %v407_v1  ;;  %v33_v3 = vld [vmem:[%s552_s1 + $0x8] sm:$0xff]  ;;  %365 = vmatprep.mubr.msk.f32.mxu1 %vm408_vm1, %v407_v1  ;;  %v32_v4 = vld [vmem:[%s552_s1] sm:$0xff]  ;;  %vm163_vm2 = vcmask 785408   ;;  %s409_s30 = smov [#allocation3]  }
   0x4   :  { %327 = vmatpush3.msra.mxu0 %v34_v2  ;;  %v29_v5 = vld [vmem:[%s551_s0] sm:$0xff]  ;;  %v30_v6 = vld [vmem:[%s551_s0 + $0x8] sm:$0xff]  ;;  %v31_v7 = vld [vmem:[%s551_s0 + $0x10] sm:$0xff]  ;;  %s283_s6 = sshll.u32 %s409_s30, 4  ;;  %s284_s6 = int_to_ptr.vmem [resolvable:$true] %s283_s6 }
   0x5   :  { %328 = vmatprep.subr.mxu0 %v407_v1  ;;  %v162_v8 = vld [vmem:[%s554_s3 + $0x58] sm:$0xff]  ;;  %v161_v9 = vld [vmem:[%s554_s3 + $0x50] sm:$0xff]  ;;  %v160_v10 = vld [vmem:[%s554_s3 + $0x48] sm:$0xff]  ;;  %p390_p1 = scmp.lt.s32.totalorder %s284_s6, %s284_s6 }
   0x6   :  { %329 = vmatpush3.msra.mxu0 %v33_v3  ;;  %342 = vmatpush3.msra.mxu1 %v162_v8  ;;  %v159_v11 = vld [vmem:[%s554_s3 + $0x40] sm:$0xff]  ;;  %v158_v12 = vld [vmem:[%s554_s3 + $0x38] sm:$0xff]  ;;  %v157_v13 = vld [vmem:[%s554_s3 + $0x30] sm:$0xff] }
   0x7   :  { %330 = vmatprep.subr.mxu0 %v407_v1  ;;  %343 = vmatprep.subr.mxu1 %v407_v1  ;;  %v156_v14 = vld [vmem:[%s554_s3 + $0x28] sm:$0xff]  ;;  %v155_v15 = vld [vmem:[%s554_s3 + $0x20] sm:$0xff]  ;;  %v154_v16 = vld [vmem:[%s554_s3 + $0x18] sm:$0xff] }
   0x8   :  { %331 = vmatpush3.msra.mxu0 %v32_v4  ;;  %344 = vmatpush3.msra.mxu1 %v161_v9  ;;  %v153_v17 = vld [vmem:[%s554_s3 + $0x10] sm:$0xff]  ;;  %v152_v18 = vld [vmem:[%s554_s3 + $0x8] sm:$0xff]  ;;  %v151_v19 = vld [vmem:[%s554_s3] sm:$0xff] }
   0x9   :  { %333 = vmatmul.mubr.msk.f32.vlgmr.msra.gmra.mxu0 %vm25_vm0, %v29_v5  ;;  %345 = vmatprep.subr.mxu1 %v407_v1  ;;  %v294_v20 = vld [vmem:[%s553_s2] ss:$0 sm:$0xff]  ;;  %v149_v49 = vld [vmem:[#allocation2 + $0x8] sm:$0xff]  ;;  %v150_v53 = vld [vmem:[#allocation2 + $0x10] sm:$0xff] }
   0xa   :  { %335 = vmatprep.mubr.msk.f32.mxu0 %vm408_vm1, %v407_v1  ;;  %346 = vmatpush3.msra.mxu1 %v160_v10  ;;  %v148_v45 = vld [vmem:[#allocation2] sm:$0xff] }
   0xb   :  { %347 = vmatprep.subr.mxu1 %v407_v1  ;;  %v301_v55 = vld [vmem:[%s555_s4] ss:$0 sm:$0xff]  ;;  %s385_s4 = scalar_lea.vmem %s284_s6, 384 }
   0xc   :  { %348 = vmatpush3.msra.mxu1 %v159_v11  ;;  %p386_p0 = scmp.ne.s32.totalorder %s284_s6, %s385_s4  ;;  %p391_p2 = scmp.lt.s32.totalorder %s385_s4, %s385_s4 }
   0xd   :  { %336 = vmatmul.mubr.msk.f32.gmra.mxu0 %vm25_vm0, %v30_v6  ;;  %349 = vmatprep.subr.mxu1 %v407_v1 }
   0xe   :  { %338 = vmatprep.mubr.msk.f32.mxu0 %vm408_vm1, %v407_v1  ;;  %350 = vmatpush3.msra.mxu1 %v158_v12  ;;  %p392_p3 = por %p391_p2, %p390_p1 }
   0xf   :  { %351 = vmatprep.subr.mxu1 %v407_v1 }
  0x10   :  { %352 = vmatpush3.msra.mxu1 %v157_v13  ;;  %p393_p4 = pnand %p392_p3, %p386_p0 }
  0x11   :  { %339 = vmatmul.mubr.msk.f32.gmra.mxu0 %vm25_vm0, %v31_v7  ;;  %353 = vmatprep.subr.mxu1 %v407_v1 }
  0x12   :  { %354 = vmatpush3.msra.mxu1 %v156_v14 }
  0x13   :  { %355 = vmatprep.subr.mxu1 %v407_v1 }
  0x14   :  { %356 = vmatpush3.msra.mxu1 %v155_v15 }
  0x15   :  { %357 = vmatprep.subr.mxu1 %v407_v1 }
  0x16   :  { %358 = vmatpush3.msra.mxu1 %v154_v16 }
  0x17   :  { %359 = vmatprep.subr.mxu1 %v407_v1 }
  0x18   :  { %360 = vmatpush3.msra.mxu1 %v153_v17 }
  0x19   :  { %361 = vmatprep.subr.mxu1 %v407_v1 }
  0x1a   :  { %362 = vmatpush3.msra.mxu1 %v152_v18 }
  0x1b   :  { %363 = vmatprep.subr.mxu1 %v407_v1 }
  0x1c   :  { %364 = vmatpush3.msra.mxu1 %v151_v19 }
  0xc9   :  { %v119_v21 = vpop.f32.mrf.mxu0 }
  0xca   :  { %v120_v22 = vadd.f32 %v294_v20, %v119_v21 }
  0xcb   :  { %v334_v23 = vpop.f32.mrf.mxu0 }
  0xcc   :  { %v136_v24 = vmul.f32 0.70710677, %v120_v22  ;;  %v133_v34 = vmul.f32 0.5, %v120_v22 }
  0xcd   :  { %v124_v25 = vpop.f32.mrf.mxu0 }
  0xce   :  { %379 = verf.f32 %v136_v24  ;;  %v125_v26 = vadd.f32 %v294_v20, %v124_v25 }
  0xcf   :  { %v337_v27 = vpop.f32.mrf.mxu0 }
  0xd0   :  { %v137_v28 = vmul.f32 0.70710677, %v125_v26  ;;  %v134_v38 = vmul.f32 0.5, %v125_v26 }
  0xd1   :  { %v129_v29 = vpop.f32.mrf.mxu0 }
  0xd2   :  { %381 = verf.f32 %v137_v28  ;;  %v130_v30 = vadd.f32 %v294_v20, %v129_v29 }
  0xd3   :  { %v340_v31 = vpop.f32.mrf.mxu0 }
  0xd4   :  { %v138_v32 = vmul.f32 0.70710677, %v130_v30  ;;  %v135_v42 = vmul.f32 0.5, %v130_v30 }
  0xd6   :  { %383 = verf.f32 %v138_v32 }
  0xdb   :  { %v380_v33 = vpop.eup %379 }
  0xdc   :  { %v142_v35 = vadd.f32 1.0, %v380_v33 }
  0xde   :  { %v145_v36 = vmul.f32 %v142_v35, %v133_v34 }
  0xdf   :  { %v382_v37 = vpop.eup %381 }
  0xe0   :  { %v143_v39 = vadd.f32 1.0, %v382_v37  ;;  %366 = vmatmul.mubr.msk.f32.vlgmr.msra.gmra.mxu1 %vm163_vm2, %v145_v36 }
  0xe1   :  { %368 = vmatprep.mubr.msk.f32.mxu1 %vm408_vm1, %v407_v1 }
  0xe2   :  { %v146_v40 = vmul.f32 %v143_v39, %v134_v38 }
  0xe3   :  { %v384_v41 = vpop.eup %383 }
  0xe4   :  { %v144_v43 = vadd.f32 1.0, %v384_v41  ;;  %369 = vmatmul.mubr.msk.f32.gmra.mxu1 %vm163_vm2, %v146_v40 }
  0xe5   :  { %371 = vmatprep.mubr.msk.f32.mxu1 %vm408_vm1, %v407_v1 }
  0xe6   :  { %v147_v44 = vmul.f32 %v144_v43, %v135_v42 }
  0xe8   :  { %372 = vmatmul.mubr.msk.f32.gmra.mxu1 %vm163_vm2, %v147_v44 }
 0x1a0   :  { %v239_v46 = vpop.f32.mrf.mxu1 }
 0x1a1   :  { %v253_v47 = vadd.f32 %v239_v46, %v148_v45 }
 0x1a2   :  { %v367_v48 = vpop.f32.mrf.mxu1 }
 0x1a3   :  { %256 = vst.msk [vmem:[#allocation2] sm:$0xff] %vm25_vm0, %v253_v47 }
 0x1a4   :  { %v244_v50 = vpop.f32.mrf.mxu1 }
 0x1a5   :  { %v254_v51 = vadd.f32 %v244_v50, %v149_v49 }
 0x1a6   :  { %v370_v52 = vpop.f32.mrf.mxu1 }
 0x1a7   :  { %257 = vst.msk [vmem:[#allocation2 + $0x8] sm:$0xff] %vm25_vm0, %v254_v51 }
 0x1a8   :  { %v249_v54 = vpop.f32.mrf.mxu1 }
 0x1a9   :  { %v255_v56 = vadd.f32 %v249_v54, %v150_v53 }
 0x1aa   :  { %v373_v57 = vpop.f32.mrf.mxu1  ;;  %v262_v58 = vld [vmem:[#allocation2] sm:$0xff] }
 0x1ab   :  { %258 = vst.msk [vmem:[#allocation2 + $0x10] sm:$0xff] %vm25_vm0, %v255_v56  ;;  %v272_v59 = vadd.f32 %v301_v55, %v262_v58 }
 0x1ad   :  { %275 = vst.msk [vmem:[#allocation3] sm:$0xff] %vm25_vm0, %v272_v59 }
 0x1ae   :  { %v263_v60 = vld [vmem:[#allocation2 + $0x8] sm:$0xff] }
 0x1af   :  { %v273_v61 = vadd.f32 %v301_v55, %v263_v60 }
 0x1b1   :  { %276 = vst.msk [vmem:[#allocation3 + $0x8] sm:$0xff] %vm25_vm0, %v273_v61 }
 0x1b2   :  { %v264_v62 = vld [vmem:[#allocation2 + $0x10] sm:$0xff] }
 0x1b3   :  { %v274_v63 = vadd.f32 %v301_v55, %v264_v62 }
 0x1b5   :  { %277 = vst.msk [vmem:[#allocation3 + $0x10] sm:$0xff] %vm25_vm0, %v274_v63 }
 0x1b6   :  { %396 = shalt.err (!%p393_p4)
}
 0x1b7   :  { %s410_s7 = smov 128   ;;  %s411_s8 = smov 8  }
 0x1b8   :  { %289 = dma.vmem_to_hbm [thread:$0]  %s284_s6, 384, %s556_s5, [#allocation4], %s410_s7, %s410_s7, %s411_s8  }
 0x1b9   :  { %405 = dma.done.wait [#allocation4], 384  }
 0x1ba   :  { %406 = vsyncadd [#allocation4], 4294966912 }
 0x1bb   :  { %293 = vsyncpa [#allocation4], 1 }

// kernel: tpu_custom_call.1
= control target key start
LH: loop header
LB: loop body
LE: loop exit
PB: predicated region body
PF: predicated region fallthrough
CT: control target
= control target key end

     0   :  { %vm25_vm0 = vcmask 261120   ;;  %v407_v1 = vmov 0.0   ;;  %vm408_vm1 = vmmov 0   ;;  %s551_s0 = inlined_call_operand.vmem [shape: f32[24,32], index: 0, kind: input, shape index: {}]   ;;  %s552_s1 = inlined_call_operand.vmem [shape: f32[32,96], index: 1, kind: input, shape index: {}]   ;;  %s553_s2 = inlined_call_operand.vmem [shape: f32[1,96], index: 2, kind: input, shape index: {}]   ;;  %s554_s3 = inlined_call_operand.vmem [shape: f32[96,32], index: 3, kind: input, shape index: {}]   ;;  %s555_s4 = inlined_call_operand.vmem [shape: f32[1,32], index: 4, kind: input, shape index: {}]   ;;  %s556_s5 = inlined_call_operand.hbm [shape: f32[24,32], index: 5, kind: output, shape index: {}]  }
   0x1   :  { %v35_v0 = vld [vmem:[%s552_s1 + $0x18] sm:$0xff]  ;;  %324 = vmatprep.subr.mxu0 %v407_v1  ;;  %v34_v2 = vld [vmem:[%s552_s1 + $0x10] sm:$0xff]  ;;  %332 = vmatprep.mubr.msk.f32.mxu0 %vm408_vm1, %v407_v1  ;;  %26 = vst.msk [vmem:[#allocation2] sm:$0xff] %vm25_vm0, %v407_v1  ;;  %27 = vst.msk [vmem:[#allocation2 + $0x8] sm:$0xff] %vm25_vm0, %v407_v1 }
   0x2   :  { %28 = vst.msk [vmem:[#allocation2 + $0x10] sm:$0xff] %vm25_vm0, %v407_v1  ;;  %325 = vmatpush3.msra.mxu0 %v35_v0  ;;  %341 = vmatprep.subr.mxu1 %v407_v1 }
   0x3   :  { %10 = vsyncpa [#allocation4], 0  ;;  %326 = vmatprep.subr.mxu0 %v407_v1  ;;  %v33_v3 = vld [vmem:[%s552_s1 + $0x8] sm:$0xff]  ;;  %365 = vmatprep.mubr.msk.f32.mxu1 %vm408_vm1, %v407_v1  ;;  %v32_v4 = vld [vmem:[%s552_s1] sm:$0xff]  ;;  %vm163_vm2 = vcmask 785408   ;;  %s409_s30 = smov [#allocation3]  }
   0x4   :  { %327 = vmatpush3.msra.mxu0 %v34_v2  ;;  %v29_v5 = vld [vmem:[%s551_s0] sm:$0xff]  ;;  %v30_v6 = vld [vmem:[%s551_s0 + $0x8] sm:$0xff]  ;;  %v31_v7 = vld [vmem:[%s551_s0 + $0x10] sm:$0xff]  ;;  %s283_s6 = sshll.u32 %s409_s30, 4  ;;  %s284_s6 = int_to_ptr.vmem [resolvable:$true] %s283_s6 }
   0x5   :  { %328 = vmatprep.subr.mxu0 %v407_v1  ;;  %v162_v8 = vld [vmem:[%s554_s3 + $0x58] sm:$0xff]  ;;  %v161_v9 = vld [vmem:[%s554_s3 + $0x50] sm:$0xff]  ;;  %v160_v10 = vld [vmem:[%s554_s3 + $0x48] sm:$0xff]  ;;  %p390_p1 = scmp.lt.s32.totalorder %s284_s6, %s284_s6 }
   0x6   :  { %329 = vmatpush3.msra.mxu0 %v33_v3  ;;  %342 = vmatpush3.msra.mxu1 %v162_v8  ;;  %v159_v11 = vld [vmem:[%s554_s3 + $0x40] sm:$0xff]  ;;  %v158_v12 = vld [vmem:[%s554_s3 + $0x38] sm:$0xff]  ;;  %v157_v13 = vld [vmem:[%s554_s3 + $0x30] sm:$0xff] }
   0x7   :  { %330 = vmatprep.subr.mxu0 %v407_v1  ;;  %343 = vmatprep.subr.mxu1 %v407_v1  ;;  %v156_v14 = vld [vmem:[%s554_s3 + $0x28] sm:$0xff]  ;;  %v155_v15 = vld [vmem:[%s554_s3 + $0x20] sm:$0xff]  ;;  %v154_v16 = vld [vmem:[%s554_s3 + $0x18] sm:$0xff] }
   0x8   :  { %331 = vmatpush3.msra.mxu0 %v32_v4  ;;  %344 = vmatpush3.msra.mxu1 %v161_v9  ;;  %v153_v17 = vld [vmem:[%s554_s3 + $0x10] sm:$0xff]  ;;  %v152_v18 = vld [vmem:[%s554_s3 + $0x8] sm:$0xff]  ;;  %v151_v19 = vld [vmem:[%s554_s3] sm:$0xff] }
   0x9   :  { %333 = vmatmul.mubr.msk.f32.vlgmr.msra.gmra.mxu0 %vm25_vm0, %v29_v5  ;;  %345 = vmatprep.subr.mxu1 %v407_v1  ;;  %v294_v20 = vld [vmem:[%s553_s2] ss:$0 sm:$0xff]  ;;  %v149_v49 = vld [vmem:[#allocation2 + $0x8] sm:$0xff]  ;;  %v150_v53 = vld [vmem:[#allocation2 + $0x10] sm:$0xff] }
   0xa   :  { %335 = vmatprep.mubr.msk.f32.mxu0 %vm408_vm1, %v407_v1  ;;  %346 = vmatpush3.msra.mxu1 %v160_v10  ;;  %v148_v45 = vld [vmem:[#allocation2] sm:$0xff] }
   0xb   :  { %347 = vmatprep.subr.mxu1 %v407_v1  ;;  %v301_v55 = vld [vmem:[%s555_s4] ss:$0 sm:$0xff]  ;;  %s385_s4 = scalar_lea.vmem %s284_s6, 384 }
   0xc   :  { %348 = vmatpush3.msra.mxu1 %v159_v11  ;;  %p386_p0 = scmp.ne.s32.totalorder %s284_s6, %s385_s4  ;;  %p391_p2 = scmp.lt.s32.totalorder %s385_s4, %s385_s4 }
   0xd   :  { %336 = vmatmul.mubr.msk.f32.gmra.mxu0 %vm25_vm0, %v30_v6  ;;  %349 = vmatprep.subr.mxu1 %v407_v1 }
   0xe   :  { %338 = vmatprep.mubr.msk.f32.mxu0 %vm408_vm1, %v407_v1  ;;  %350 = vmatpush3.msra.mxu1 %v158_v12  ;;  %p392_p3 = por %p391_p2, %p390_p1 }
   0xf   :  { %351 = vmatprep.subr.mxu1 %v407_v1 }
  0x10   :  { %352 = vmatpush3.msra.mxu1 %v157_v13  ;;  %p393_p4 = pnand %p392_p3, %p386_p0 }
  0x11   :  { %339 = vmatmul.mubr.msk.f32.gmra.mxu0 %vm25_vm0, %v31_v7  ;;  %353 = vmatprep.subr.mxu1 %v407_v1 }
  0x12   :  { %354 = vmatpush3.msra.mxu1 %v156_v14 }
  0x13   :  { %355 = vmatprep.subr.mxu1 %v407_v1 }
  0x14   :  { %356 = vmatpush3.msra.mxu1 %v155_v15 }
  0x15   :  { %357 = vmatprep.subr.mxu1 %v407_v1 }
  0x16   :  { %358 = vmatpush3.msra.mxu1 %v154_v16 }
  0x17   :  { %359 = vmatprep.subr.mxu1 %v407_v1 }
  0x18   :  { %360 = vmatpush3.msra.mxu1 %v153_v17 }
  0x19   :  { %361 = vmatprep.subr.mxu1 %v407_v1 }
  0x1a   :  { %362 = vmatpush3.msra.mxu1 %v152_v18 }
  0x1b   :  { %363 = vmatprep.subr.mxu1 %v407_v1 }
  0x1c   :  { %364 = vmatpush3.msra.mxu1 %v151_v19 }
  0xc9   :  { %v119_v21 = vpop.f32.mrf.mxu0 }
  0xca   :  { %v120_v22 = vadd.f32 %v294_v20, %v119_v21 }
  0xcb   :  { %v334_v23 = vpop.f32.mrf.mxu0 }
  0xcc   :  { %v136_v24 = vmul.f32 0.70710677, %v120_v22  ;;  %v133_v34 = vmul.f32 0.5, %v120_v22 }
  0xcd   :  { %v124_v25 = vpop.f32.mrf.mxu0 }
  0xce   :  { %379 = verf.f32 %v136_v24  ;;  %v125_v26 = vadd.f32 %v294_v20, %v124_v25 }
  0xcf   :  { %v337_v27 = vpop.f32.mrf.mxu0 }
  0xd0   :  { %v137_v28 = vmul.f32 0.70710677, %v125_v26  ;;  %v134_v38 = vmul.f32 0.5, %v125_v26 }
  0xd1   :  { %v129_v29 = vpop.f32.mrf.mxu0 }
  0xd2   :  { %381 = verf.f32 %v137_v28  ;;  %v130_v30 = vadd.f32 %v294_v20, %v129_v29 }
  0xd3   :  { %v340_v31 = vpop.f32.mrf.mxu0 }
  0xd4   :  { %v138_v32 = vmul.f32 0.70710677, %v130_v30  ;;  %v135_v42 = vmul.f32 0.5, %v130_v30 }
  0xd6   :  { %383 = verf.f32 %v138_v32 }
  0xdb   :  { %v380_v33 = vpop.eup %379 }
  0xdc   :  { %v142_v35 = vadd.f32 1.0, %v380_v33 }
  0xde   :  { %v145_v36 = vmul.f32 %v142_v35, %v133_v34 }
  0xdf   :  { %v382_v37 = vpop.eup %381 }
  0xe0   :  { %v143_v39 = vadd.f32 1.0, %v382_v37  ;;  %366 = vmatmul.mubr.msk.f32.vlgmr.msra.gmra.mxu1 %vm163_vm2, %v145_v36 }
  0xe1   :  { %368 = vmatprep.mubr.msk.f32.mxu1 %vm408_vm1, %v407_v1 }
  0xe2   :  { %v146_v40 = vmul.f32 %v143_v39, %v134_v38 }
  0xe3   :  { %v384_v41 = vpop.eup %383 }
  0xe4   :  { %v144_v43 = vadd.f32 1.0, %v384_v41  ;;  %369 = vmatmul.mubr.msk.f32.gmra.mxu1 %vm163_vm2, %v146_v40 }
  0xe5   :  { %371 = vmatprep.mubr.msk.f32.mxu1 %vm408_vm1, %v407_v1 }
  0xe6   :  { %v147_v44 = vmul.f32 %v144_v43, %v135_v42 }
  0xe8   :  { %372 = vmatmul.mubr.msk.f32.gmra.mxu1 %vm163_vm2, %v147_v44 }
 0x1a0   :  { %v239_v46 = vpop.f32.mrf.mxu1 }
 0x1a1   :  { %v253_v47 = vadd.f32 %v239_v46, %v148_v45 }
 0x1a2   :  { %v367_v48 = vpop.f32.mrf.mxu1 }
 0x1a3   :  { %256 = vst.msk [vmem:[#allocation2] sm:$0xff] %vm25_vm0, %v253_v47 }
 0x1a4   :  { %v244_v50 = vpop.f32.mrf.mxu1 }
 0x1a5   :  { %v254_v51 = vadd.f32 %v244_v50, %v149_v49 }
 0x1a6   :  { %v370_v52 = vpop.f32.mrf.mxu1 }
 0x1a7   :  { %257 = vst.msk [vmem:[#allocation2 + $0x8] sm:$0xff] %vm25_vm0, %v254_v51 }
 0x1a8   :  { %v249_v54 = vpop.f32.mrf.mxu1 }
 0x1a9   :  { %v255_v56 = vadd.f32 %v249_v54, %v150_v53 }
 0x1aa   :  { %v373_v57 = vpop.f32.mrf.mxu1  ;;  %v262_v58 = vld [vmem:[#allocation2] sm:$0xff] }
 0x1ab   :  { %258 = vst.msk [vmem:[#allocation2 + $0x10] sm:$0xff] %vm25_vm0, %v255_v56  ;;  %v272_v59 = vadd.f32 %v301_v55, %v262_v58 }
 0x1ad   :  { %275 = vst.msk [vmem:[#allocation3] sm:$0xff] %vm25_vm0, %v272_v59 }
 0x1ae   :  { %v263_v60 = vld [vmem:[#allocation2 + $0x8] sm:$0xff] }
 0x1af   :  { %v273_v61 = vadd.f32 %v301_v55, %v263_v60 }
 0x1b1   :  { %276 = vst.msk [vmem:[#allocation3 + $0x8] sm:$0xff] %vm25_vm0, %v273_v61 }
 0x1b2   :  { %v264_v62 = vld [vmem:[#allocation2 + $0x10] sm:$0xff] }
 0x1b3   :  { %v274_v63 = vadd.f32 %v301_v55, %v264_v62 }
 0x1b5   :  { %277 = vst.msk [vmem:[#allocation3 + $0x10] sm:$0xff] %vm25_vm0, %v274_v63 }
 0x1b6   :  { %396 = shalt.err (!%p393_p4)
}
 0x1b7   :  { %s410_s7 = smov 128   ;;  %s411_s8 = smov 8  }
 0x1b8   :  { %289 = dma.vmem_to_hbm [thread:$0]  %s284_s6, 384, %s556_s5, [#allocation4], %s410_s7, %s410_s7, %s411_s8  }
 0x1b9   :  { %405 = dma.done.wait [#allocation4], 384  }
 0x1ba   :  { %406 = vsyncadd [#allocation4], 4294966912 }
 0x1bb   :  { %293 = vsyncpa [#allocation4], 1 }

</bundles_post_ra>
